<compile_context>
chip_gen: v5e
topology: v5e:2x2
jax: 0.10.0
libtpu: 0.0.40
codegen_flags: <defaults>
</compile_context>

<pallas_src>
import jax
import jax.numpy as jnp
from jax.experimental import pallas as pl
from jax.experimental.pallas import tpu as pltpu

d_model = 64
d_ff = 512
LN_EPS = 1e-5


def ffn_ln_kernel(x_ref, w1_ref, w2_ref, o_ref):
    # x_ref: (tm, d_model), w1_ref: (d_model, d_ff), w2_ref: (d_ff, d_model)
    x = x_ref[...]                                     # bf16 (or f32 if opted out)

    # Linear(d_model -> d_ff, bias=False) + ReLU   (MXU matmul, f32 accumulate)
    h = jnp.dot(x, w1_ref[...], preferred_element_type=jnp.float32)
    h = jnp.maximum(h, 0.0)

    # Linear(d_ff -> d_model, bias=False); cast h to the weight dtype (bf16 by
    # default) so the second dot also runs at full bf16 MXU rate.
    y = jnp.dot(h.astype(w2_ref.dtype), w2_ref[...],
                preferred_element_type=jnp.float32)

    # residual add + LayerNorm over last dim (gamma=1, beta=0, biased variance)
    y = y + x.astype(jnp.float32)
    mean = jnp.mean(y, axis=-1, keepdims=True)
    centered = y - mean
    var = jnp.mean(centered * centered, axis=-1, keepdims=True)
    o_ref[...] = (centered * jax.lax.rsqrt(var + LN_EPS)).astype(o_ref.dtype)


def _round_up(a, b):
    return ((a + b - 1) // b) * b


def _num_tensorcores():
    """Best-effort TensorCore count (2 on v7x, 1 on v5e/v6e). Defaults to 1."""
    try:
        info = pltpu.get_tpu_info()
    except Exception:
        return 1
    for name in ("num_cores", "tensorcore_count", "num_tensorcores",
                 "core_count", "cores_per_chip"):
        n = getattr(info, name, None)
        try:
            n = int(n)
        except (TypeError, ValueError):
            continue
        if n >= 1:
            return n
    return 1


def _pick_tile(n_tokens, tm, two_cores):
    """Row tile: as large as possible (amortize ~0.35us/step overhead), split
    only when the chip actually has 2 TensorCores and everything would land in
    a single step; 128-row aligned when large, 8-row aligned when small."""
    tm = min(tm, n_tokens)
    if two_cores and n_tokens > 256 and pl.cdiv(n_tokens, tm) < 2:
        tm = pl.cdiv(n_tokens, 2)          # one step per TensorCore (v7x)
    if tm >= 128:
        tm = _round_up(tm, 128)
    else:
        tm = _round_up(max(tm, 8), 8)
    return tm


def poswise_ffn(x, w1, w2, *, tm=1024, use_bf16_matmul=True):
    """x: (B, S, d_model); w1: (d_model, d_ff); w2: (d_ff, d_model).

    w1/w2 are the PyTorch Linear weights already transposed so the kernel
    computes x @ w1 and h @ w2.  Matmuls run in bf16 with f32 accumulation by
    default (use_bf16_matmul=False for strict f32)."""
    B, S, D = x.shape
    assert D == d_model
    N = B * S
    out_dtype = x.dtype

    compute_dtype = jnp.bfloat16 if use_bf16_matmul else x.dtype
    x2 = x.reshape(N, D).astype(compute_dtype)   # cast once, not per grid step
    w1c = w1.astype(compute_dtype)
    w2c = w2.astype(compute_dtype)

    tm = _pick_tile(N, tm, _num_tensorcores() >= 2)
    grid = (pl.cdiv(N, tm),)                     # partial last block is masked

    in_isz = jnp.dtype(compute_dtype).itemsize
    cost = pl.CostEstimate(
        flops=4 * N * D * d_ff,                  # two matmuls
        transcendentals=N,                       # one rsqrt per row
        bytes_accessed=(N * D * (in_isz + jnp.dtype(out_dtype).itemsize)
                        + (w1c.size + w2c.size) * in_isz),
    )

    out = pl.pallas_call(
        ffn_ln_kernel,
        out_shape=jax.ShapeDtypeStruct((N, D), out_dtype),
        grid_spec=pltpu.PrefetchScalarGridSpec(
            num_scalar_prefetch=0,
            grid=grid,
            in_specs=[
                pl.BlockSpec((tm, D), lambda i: (i, 0)),      # x row-tile
                pl.BlockSpec((D, d_ff), lambda i: (0, 0)),    # W1 (VMEM-resident)
                pl.BlockSpec((d_ff, D), lambda i: (0, 0)),    # W2 (VMEM-resident)
            ],
            out_specs=pl.BlockSpec((tm, D), lambda i: (i, 0)),
        ),
        compiler_params=pltpu.CompilerParams(
            dimension_semantics=("parallel",),
        ),
        cost_estimate=cost,
    )(x2, w1c, w2c)

    return out.reshape(B, S, D)


def reference(x, w1, w2, *, use_bf16_matmul=True):
    """Pure-JAX reference mirroring the kernel's quantization points."""
    if use_bf16_matmul:
        dt = jnp.bfloat16
        xc, w1c, w2c = x.astype(dt), w1.astype(dt), w2.astype(dt)
        h = jnp.maximum(jnp.dot(xc, w1c, preferred_element_type=jnp.float32), 0.0)
        y = jnp.dot(h.astype(dt), w2c, preferred_element_type=jnp.float32)
        y = y + xc.astype(jnp.float32)
    else:
        prec = jax.lax.Precision.HIGHEST
        h = jnp.maximum(jnp.dot(x, w1, precision=prec,
                                preferred_element_type=jnp.float32), 0.0)
        y = jnp.dot(h, w2, precision=prec, preferred_element_type=jnp.float32)
        y = y + x.astype(jnp.float32)
    mean = jnp.mean(y, axis=-1, keepdims=True)
    var = jnp.mean((y - mean) ** 2, axis=-1, keepdims=True)
    return ((y - mean) * jax.lax.rsqrt(var + LN_EPS)).astype(x.dtype)


if __name__ == "__main__":
    key = jax.random.PRNGKey(0)
    kx, k1, k2, kx2 = jax.random.split(key, 4)

    # Deterministic parameter init (stand-in for nn.Linear's kaiming uniform);
    # stored already transposed so the kernel does x @ W1, h @ W2.
    bound1 = 1.0 / (d_model ** 0.5)
    bound2 = 1.0 / (d_ff ** 0.5)
    w1 = jax.random.uniform(k1, (d_model, d_ff), jnp.float32, -bound1, bound1)
    w2 = jax.random.uniform(k2, (d_ff, d_model), jnp.float32, -bound2, bound2)

    # Small shape consistent with the module's usage (batch=2, seq=8).
    B, S = 2, 8
    x = jax.random.normal(kx, (B, S, d_model), dtype=jnp.float32)

    # Default (bf16 matmul) path.
    out = jax.block_until_ready(poswise_ffn(x, w1, w2))
    ref = reference(x, w1, w2, use_bf16_matmul=True)
    assert out.shape == (B, S, d_model)
    assert jnp.allclose(out, ref, atol=2e-3, rtol=2e-3), "mismatch (bf16 path)"

    # Strict-f32 opt-out path.
    out_f32 = jax.block_until_ready(poswise_ffn(x, w1, w2, use_bf16_matmul=False))
    ref_f32 = reference(x, w1, w2, use_bf16_matmul=False)
    assert jnp.allclose(out_f32, ref_f32, atol=2e-3, rtol=2e-3), "mismatch (f32 path)"

    # Larger shape whose token count is not a multiple of tm: exercises the
    # cdiv grid with a masked partial last block (no host-side pad/slice).
    B2, S2 = 4, 333
    x_big = jax.random.normal(kx2, (B2, S2, d_model), dtype=jnp.float32)
    out_big = jax.block_until_ready(poswise_ffn(x_big, w1, w2))
    ref_big = reference(x_big, w1, w2, use_bf16_matmul=True)
    assert out_big.shape == (B2, S2, d_model)
    assert jnp.allclose(out_big, ref_big, atol=2e-3, rtol=2e-3), "mismatch (big)"

    print("KERNEL_OK")
</pallas_src>

<mosaic_0001>
module attributes {stable_mosaic.version = 11 : i64} {
  func.func @ffn_ln_kernel(%arg0: i32, %arg1: memref<16x64xbf16, #tpu.memory_space<vmem>>, %arg2: memref<64x512xbf16, #tpu.memory_space<vmem>>, %arg3: memref<512x64xbf16, #tpu.memory_space<vmem>>, %arg4: memref<16x64xf32, #tpu.memory_space<vmem>>) attributes {dimension_semantics = [#tpu.dimension_semantics<parallel>], iteration_bounds = array<i64: 1>, scalar_prefetch = 0 : i64, scratch_operands = 0 : i64, tpu.core_type = #tpu.core_type<tc>, window_params = [{transform_indices = @transform_0, window_bounds = array<i64: 16, 64>}, {pipeline_mode = #tpu.pipeline_mode<synchronous>, transform_indices = @transform_1, window_bounds = array<i64: 64, 512>}, {pipeline_mode = #tpu.pipeline_mode<synchronous>, transform_indices = @transform_2, window_bounds = array<i64: 512, 64>}, {transform_indices = @transform_3, window_bounds = array<i64: 16, 64>}]} {
    %c0 = arith.constant 0 : index
    %c0_0 = arith.constant 0 : index
    %0 = vector.load %arg1[%c0, %c0_0] : memref<16x64xbf16, #tpu.memory_space<vmem>>, vector<16x64xbf16>
    %c0_1 = arith.constant 0 : index
    %c0_2 = arith.constant 0 : index
    %1 = vector.load %arg2[%c0_1, %c0_2] : memref<64x512xbf16, #tpu.memory_space<vmem>>, vector<64x512xbf16>
    %cst = arith.constant dense<0.000000e+00> : vector<16x512xf32>
    %2 = tpu.matmul %0, %1, %cst {dimension_numbers = #tpu.dot_dimension_numbers<[1], [0], [0], [1], [0, 0, 1, 1], [], []>} : vector<16x64xbf16>, vector<64x512xbf16>, vector<16x512xf32> -> vector<16x512xf32>
    %cst_3 = arith.constant 0.000000e+00 : f32
    %3 = vector.broadcast %cst_3 : f32 to vector<16x512xf32>
    %4 = arith.maximumf %2, %3 : vector<16x512xf32>
    %5 = arith.truncf %4 : vector<16x512xf32> to vector<16x512xbf16>
    %c0_4 = arith.constant 0 : index
    %c0_5 = arith.constant 0 : index
    %6 = vector.load %arg3[%c0_4, %c0_5] : memref<512x64xbf16, #tpu.memory_space<vmem>>, vector<512x64xbf16>
    %cst_6 = arith.constant dense<0.000000e+00> : vector<16x64xf32>
    %7 = tpu.matmul %5, %6, %cst_6 {dimension_numbers = #tpu.dot_dimension_numbers<[1], [0], [0], [1], [0, 0, 1, 1], [], []>} : vector<16x512xbf16>, vector<512x64xbf16>, vector<16x64xf32> -> vector<16x64xf32>
    %8 = arith.extf %0 : vector<16x64xbf16> to vector<16x64xf32>
    %9 = arith.addf %7, %8 : vector<16x64xf32>
    %cst_7 = arith.constant dense<0.000000e+00> : vector<16xf32>
    %10 = vector.multi_reduction <add>, %9, %cst_7 [1] : vector<16x64xf32> to vector<16xf32>
    %11 = vector.shape_cast %10 : vector<16xf32> to vector<16x1xf32>
    %cst_8 = arith.constant 6.400000e+01 : f32
    %12 = vector.broadcast %cst_8 : f32 to vector<16x1xf32>
    %13 = arith.divf %11, %12 : vector<16x1xf32>
    %14 = vector.broadcast %13 : vector<16x1xf32> to vector<16x64xf32>
    %15 = arith.subf %9, %14 : vector<16x64xf32>
    %16 = arith.mulf %15, %15 : vector<16x64xf32>
    %cst_9 = arith.constant dense<0.000000e+00> : vector<16xf32>
    %17 = vector.multi_reduction <add>, %16, %cst_9 [1] : vector<16x64xf32> to vector<16xf32>
    %18 = vector.shape_cast %17 : vector<16xf32> to vector<16x1xf32>
    %cst_10 = arith.constant 6.400000e+01 : f32
    %19 = vector.broadcast %cst_10 : f32 to vector<16x1xf32>
    %20 = arith.divf %18, %19 : vector<16x1xf32>
    %cst_11 = arith.constant 9.99999974E-6 : f32
    %21 = vector.broadcast %cst_11 : f32 to vector<16x1xf32>
    %22 = arith.addf %20, %21 : vector<16x1xf32>
    %23 = math.rsqrt %22 : vector<16x1xf32>
    %24 = vector.broadcast %23 : vector<16x1xf32> to vector<16x64xf32>
    %25 = arith.mulf %15, %24 : vector<16x64xf32>
    %c0_12 = arith.constant 0 : index
    %c0_13 = arith.constant 0 : index
    %26 = vector.load %arg4[%c0_12, %c0_13] : memref<16x64xf32, #tpu.memory_space<vmem>>, vector<16x64xf32>
    tpu.vector_store %arg4[%c0_12, %c0_13], %25 {strides = array<i32>} : memref<16x64xf32, #tpu.memory_space<vmem>>, vector<16x64xf32>,
    return
  }
  func.func @transform_0(%arg0: i32) -> (i32, i32) {
    %c0_i32 = arith.constant 0 : i32
    %c0_i32_0 = arith.constant 0 : i32
    return %arg0, %c0_i32 : i32, i32
  }
  func.func @transform_1(%arg0: i32) -> (i32, i32) {
    %c0_i32 = arith.constant 0 : i32
    %c0_i32_0 = arith.constant 0 : i32
    %c0_i32_1 = arith.constant 0 : i32
    return %c0_i32, %c0_i32_0 : i32, i32
  }
  func.func @transform_2(%arg0: i32) -> (i32, i32) {
    %c0_i32 = arith.constant 0 : i32
    %c0_i32_0 = arith.constant 0 : i32
    %c0_i32_1 = arith.constant 0 : i32
    return %c0_i32, %c0_i32_0 : i32, i32
  }
  func.func @transform_3(%arg0: i32) -> (i32, i32) {
    %c0_i32 = arith.constant 0 : i32
    %c0_i32_0 = arith.constant 0 : i32
    return %arg0, %c0_i32 : i32, i32
  }
}

</mosaic_0001>

<bundles_post_ra>
// kernel: tpu_custom_call.1
= control target key start
LH: loop header
LB: loop body
LE: loop exit
PB: predicated region body
PF: predicated region fallthrough
CT: control target
= control target key end

     0   :  { %vm119_vm0 = vcmask 523264   ;;  %s1096_s0 = inlined_call_operand.vmem [shape: bf16[16,64], index: 0, kind: input, shape index: {}]   ;;  %s1097_s1 = inlined_call_operand.vmem [shape: bf16[64,512], index: 1, kind: input, shape index: {}]   ;;  %s1098_s2 = inlined_call_operand.vmem [shape: bf16[512,64], index: 2, kind: input, shape index: {}]   ;;  %s1099_s3 = inlined_call_operand.hbm [shape: f32[16,64], index: 3, kind: output, shape index: {}]  }
   0x1   :  { %v630_v0 = vld [vmem:[%s1097_s1 + $0x60] sm:$0xf]  ;;  %v791_v1 = vld [vmem:[%s1097_s1 + $0x6c] sm:$0xf0]  ;;  %v789_v2 = vld [vmem:[%s1097_s1 + $0x64] sm:$0xf] }
   0x2   :  { %v631_v3 = vor.u32 %v791_v1, %v630_v0  ;;  %v632_v4 = vld [vmem:[%s1097_s1 + $0x70] sm:$0xf0]  ;;  %v638_v5 = vld [vmem:[%s1097_s1 + $0x68] sm:$0xf]  ;;  %v792_v6 = vld [vmem:[%s1097_s1 + $0x74] sm:$0xf0] }
   0x3   :  { %v635_v7 = vor.u32 %v789_v2, %v632_v4  ;;  %v639_v8 = vor.u32 %v792_v6, %v638_v5  ;;  %v790_v9 = vld [vmem:[%s1097_s1 + $0x6c] sm:$0xf]  ;;  %v640_v10 = vld [vmem:[%s1097_s1 + $0x78] sm:$0xf0]  ;;  %v614_v11 = vld [vmem:[%s1097_s1 + $0x40] sm:$0xf] }
   0x4   :  { %127 = vmatpush.bf16.msra.mxu0 %v631_v3  ;;  %v643_v12 = vor.u32 %v790_v9, %v640_v10  ;;  %v787_v13 = vld [vmem:[%s1097_s1 + $0x4c] sm:$0xf0]  ;;  %v785_v14 = vld [vmem:[%s1097_s1 + $0x44] sm:$0xf]  ;;  %v616_v15 = vld [vmem:[%s1097_s1 + $0x50] sm:$0xf0] }
   0x5   :  { %141 = vmatpush.bf16.msra.mxu1 %v635_v7  ;;  %155 = vmatpush.bf16.msra.mxu2 %v639_v8  ;;  %v615_v16 = vor.u32 %v787_v13, %v614_v11  ;;  %v619_v17 = vor.u32 %v785_v14, %v616_v15  ;;  %v622_v18 = vld [vmem:[%s1097_s1 + $0x48] sm:$0xf]  ;;  %v788_v19 = vld [vmem:[%s1097_s1 + $0x54] sm:$0xf0]  ;;  %v786_v20 = vld [vmem:[%s1097_s1 + $0x4c] sm:$0xf] }
   0x6   :  { %169 = vmatpush.bf16.msra.mxu3 %v643_v12  ;;  %v623_v21 = vor.u32 %v788_v19, %v622_v18  ;;  %v624_v22 = vld [vmem:[%s1097_s1 + $0x58] sm:$0xf0]  ;;  %v598_v23 = vld [vmem:[%s1097_s1 + $0x20] sm:$0xf]  ;;  %v783_v24 = vld [vmem:[%s1097_s1 + $0x2c] sm:$0xf0] }
   0x7   :  { %v627_v25 = vor.u32 %v786_v20, %v624_v22  ;;  %v781_v26 = vld [vmem:[%s1097_s1 + $0x24] sm:$0xf]  ;;  %v600_v27 = vld [vmem:[%s1097_s1 + $0x30] sm:$0xf0]  ;;  %v606_v28 = vld [vmem:[%s1097_s1 + $0x28] sm:$0xf]  ;;  %v599_v29 = vor.u32 %v783_v24, %v598_v23 }
   0x8   :  { %128 = vmatpush.bf16.msra.mxu0 %v615_v16  ;;  %v784_v30 = vld [vmem:[%s1097_s1 + $0x34] sm:$0xf0]  ;;  %v782_v31 = vld [vmem:[%s1097_s1 + $0x2c] sm:$0xf]  ;;  %v608_v32 = vld [vmem:[%s1097_s1 + $0x38] sm:$0xf0]  ;;  %v603_v33 = vor.u32 %v781_v26, %v600_v27 }
   0x9   :  { %142 = vmatpush.bf16.msra.mxu1 %v619_v17  ;;  %156 = vmatpush.bf16.msra.mxu2 %v623_v21  ;;  %v607_v34 = vor.u32 %v784_v30, %v606_v28  ;;  %v582_v35 = vld [vmem:[%s1097_s1] sm:$0xf]  ;;  %v779_v36 = vld [vmem:[%s1097_s1 + $0xc] sm:$0xf0]  ;;  %v777_v37 = vld [vmem:[%s1097_s1 + $0x4] sm:$0xf]  ;;  %v611_v38 = vor.u32 %v782_v31, %v608_v32 }
   0xa   :  { %170 = vmatpush.bf16.msra.mxu3 %v627_v25  ;;  %v584_v39 = vld [vmem:[%s1097_s1 + $0x10] sm:$0xf0]  ;;  %v590_v40 = vld [vmem:[%s1097_s1 + $0x8] sm:$0xf]  ;;  %v780_v41 = vld [vmem:[%s1097_s1 + $0x14] sm:$0xf0]  ;;  %v583_v44 = vor.u32 %v779_v36, %v582_v35 }
   0xb   :  { %v778_v42 = vld [vmem:[%s1097_s1 + $0xc] sm:$0xf]  ;;  %v592_v43 = vld [vmem:[%s1097_s1 + $0x18] sm:$0xf0]  ;;  %v587_v45 = vor.u32 %v777_v37, %v584_v39  ;;  %v591_v46 = vor.u32 %v780_v41, %v590_v40  ;;  %v776_v49 = vld [vmem:[%s1096_s0] sm:$0xff] }
   0xc   :  { %129 = vmatpush.bf16.msra.mxu0 %v599_v29  ;;  %v595_v47 = vor.u32 %v778_v42, %v592_v43  ;;  %v800_v48 = vld [vmem:[%s1098_s2 + $0x38] sm:$0xff] }
   0xd   :  { %143 = vmatpush.bf16.msra.mxu1 %v603_v33  ;;  %157 = vmatpush.bf16.msra.mxu2 %v607_v34  ;;  %v808_v50 = vld [vmem:[%s1098_s2 + $0x78] sm:$0xff] }
   0xe   :  { %171 = vmatpush.bf16.msra.mxu3 %v611_v38  ;;  %v816_v51 = vld [vmem:[%s1098_s2 + $0xb8] sm:$0xff] }
  0x10   :  { %130 = vmatpush.bf16.msra.mxu0 %v583_v44 }
  0x11   :  { %144 = vmatpush.bf16.msra.mxu1 %v587_v45  ;;  %158 = vmatpush.bf16.msra.mxu2 %v591_v46 }
  0x12   :  { %8 = vsyncpa [#allocation3], 0  ;;  %172 = vmatpush.bf16.msra.mxu3 %v595_v47  ;;  %v799_v52 = vld [vmem:[%s1098_s2 + $0x30] sm:$0xff]  ;;  %v824_v53 = vld [vmem:[%s1098_s2 + $0xf8] sm:$0xff]  ;;  %s564_s8 = sshll.u32 %s1099_s3, 4  ;;  %s863_s9 = smov 128   ;;  %s565_s8 = int_to_ptr.hbm [resolvable:$true] %s564_s8 }
  0x13   :  { %644 = vmatmul.msk.bf16.vlgmr.msra.gmra.mxu0 %vm119_vm0, %v776_v49  ;;  %v807_v54 = vld [vmem:[%s1098_s2 + $0x70] sm:$0xff]  ;;  %v798_v56 = vld [vmem:[%s1098_s2 + $0x28] sm:$0xff]  ;;  %v797_v60 = vld [vmem:[%s1098_s2 + $0x20] sm:$0xff]  ;;  %s864_s10 = smov 8  }
  0x14   :  { %449 = vmatpush.bf16.msrb.mxu0 %v800_v48  ;;  %645 = vmatmul.msk.bf16.vlgmr.msra.gmra.mxu1 %vm119_vm0, %v776_v49  ;;  %v815_v55 = vld [vmem:[%s1098_s2 + $0xb0] sm:$0xff]  ;;  %v806_v58 = vld [vmem:[%s1098_s2 + $0x68] sm:$0xff]  ;;  %v805_v62 = vld [vmem:[%s1098_s2 + $0x60] sm:$0xff] }
  0x15   :  { %463 = vmatpush.bf16.msrb.mxu1 %v808_v50  ;;  %646 = vmatmul.msk.bf16.vlgmr.msra.gmra.mxu2 %vm119_vm0, %v776_v49  ;;  %v823_v57 = vld [vmem:[%s1098_s2 + $0xf0] sm:$0xff]  ;;  %v814_v59 = vld [vmem:[%s1098_s2 + $0xa8] sm:$0xff]  ;;  %v796_v63 = vld [vmem:[%s1098_s2 + $0x18] sm:$0xff] }
  0x16   :  { %647 = vmatmul.msk.bf16.vlgmr.msra.gmra.mxu3 %vm119_vm0, %v776_v49  ;;  %477 = vmatpush.bf16.msrb.mxu2 %v816_v51  ;;  %v822_v61 = vld [vmem:[%s1098_s2 + $0xe8] sm:$0xff]  ;;  %v804_v0 = vld [vmem:[%s1098_s2 + $0x58] sm:$0xff]  ;;  %v813_v1 = vld [vmem:[%s1098_s2 + $0xa0] sm:$0xff] }
  0x17   :  { %491 = vmatpush.bf16.msrb.mxu3 %v824_v53  ;;  %v821_v2 = vld [vmem:[%s1098_s2 + $0xe0] sm:$0xff]  ;;  %v795_v3 = vld [vmem:[%s1098_s2 + $0x10] sm:$0xff]  ;;  %v812_v5 = vld [vmem:[%s1098_s2 + $0x98] sm:$0xff] }
  0x18   :  { %450 = vmatpush.bf16.msrb.mxu0 %v799_v52  ;;  %v803_v4 = vld [vmem:[%s1098_s2 + $0x50] sm:$0xff]  ;;  %v820_v6 = vld [vmem:[%s1098_s2 + $0xd8] sm:$0xff]  ;;  %v794_v7 = vld [vmem:[%s1098_s2 + $0x8] sm:$0xff] }
  0x19   :  { %464 = vmatpush.bf16.msrb.mxu1 %v807_v54  ;;  %v802_v8 = vld [vmem:[%s1098_s2 + $0x48] sm:$0xff]  ;;  %v811_v9 = vld [vmem:[%s1098_s2 + $0x90] sm:$0xff]  ;;  %v793_v11 = vld [vmem:[%s1098_s2] sm:$0xff] }
  0x1a   :  { %478 = vmatpush.bf16.msrb.mxu2 %v815_v55  ;;  %v819_v10 = vld [vmem:[%s1098_s2 + $0xd0] sm:$0xff]  ;;  %v801_v12 = vld [vmem:[%s1098_s2 + $0x40] sm:$0xff]  ;;  %v810_v13 = vld [vmem:[%s1098_s2 + $0x88] sm:$0xff] }
  0x1b   :  { %492 = vmatpush.bf16.msrb.mxu3 %v823_v57  ;;  %v818_v14 = vld [vmem:[%s1098_s2 + $0xc8] sm:$0xff]  ;;  %v809_v15 = vld [vmem:[%s1098_s2 + $0x80] sm:$0xff] }
  0x1c   :  { %451 = vmatpush.bf16.msrb.mxu0 %v798_v56  ;;  %v817_v16 = vld [vmem:[%s1098_s2 + $0xc0] sm:$0xff] }
  0x1d   :  { %465 = vmatpush.bf16.msrb.mxu1 %v806_v58  ;;  %v16_v37 = vld [vmem:[%s1096_s0] sm:$0xff]   ;;  %v861_v58 = vmov 64.0   ;;  %s862_s0 = smov [#allocation2]  }
  0x1e   :  { %479 = vmatpush.bf16.msrb.mxu2 %v814_v59  ;;  %v255_v39 = vunpack.c.l.bf16 %v16_v37  ;;  %v256_v43 = vunpack.c.h.bf16 %v16_v37  ;;  %829 = vrcp.f32 %v861_v58  ;;  %s562_s5 = sshll.u32 %s862_s0, 4  ;;  %s563_s5 = int_to_ptr.vmem [resolvable:$true] %s562_s5 }
  0x1f   :  { %493 = vmatpush.bf16.msrb.mxu3 %v822_v61 }
  0x20   :  { %452 = vmatpush.bf16.msrb.mxu0 %v797_v60 }
  0x21   :  { %466 = vmatpush.bf16.msrb.mxu1 %v805_v62 }
  0x22   :  { %480 = vmatpush.bf16.msrb.mxu2 %v813_v1 }
  0x23   :  { %494 = vmatpush.bf16.msrb.mxu3 %v821_v2 }
  0x24   :  { %453 = vmatpush.bf16.msrb.mxu0 %v796_v63  ;;  %v830_v59 = vpop.eup %829 }
  0x25   :  { %467 = vmatpush.bf16.msrb.mxu1 %v804_v0  ;;  %v512_v60 = vmul.f32 64.0, %v830_v59  ;;  %vm516_vm1 = vweird.f32 %v830_v59 }
  0x26   :  { %481 = vmatpush.bf16.msrb.mxu2 %v812_v5 }
  0x27   :  { %495 = vmatpush.bf16.msrb.mxu3 %v820_v6  ;;  %v513_v61 = vsub.f32 1.0, %v512_v60 }
  0x28   :  { %454 = vmatpush.bf16.msrb.mxu0 %v795_v3 }
  0x29   :  { %468 = vmatpush.bf16.msrb.mxu1 %v803_v4  ;;  %v514_v62 = vmul.f32 %v830_v59, %v513_v61 }
  0x2a   :  { %482 = vmatpush.bf16.msrb.mxu2 %v811_v9 }
  0x2b   :  { %496 = vmatpush.bf16.msrb.mxu3 %v819_v10  ;;  %v515_v63 = vadd.f32 %v830_v59, %v514_v62 }
  0x2c   :  { %455 = vmatpush.bf16.msrb.mxu0 %v794_v7 }
  0x2d   :  { %469 = vmatpush.bf16.msrb.mxu1 %v802_v8  ;;  %v517_v0 = vsel %vm516_vm1, %v830_v59, %v515_v63 }
  0x2e   :  { %483 = vmatpush.bf16.msrb.mxu2 %v810_v13 }
  0x2f   :  { %497 = vmatpush.bf16.msrb.mxu3 %v818_v14 }
  0x30   :  { %456 = vmatpush.bf16.msrb.mxu0 %v793_v11 }
  0x31   :  { %470 = vmatpush.bf16.msrb.mxu1 %v801_v12 }
  0x32   :  { %484 = vmatpush.bf16.msrb.mxu2 %v809_v15 }
  0x33   :  { %498 = vmatpush.bf16.msrb.mxu3 %v817_v16 }
  0x90   :  { %v132_v17 = vpop.f32.mrf.mxu0 }
  0x91   :  { %v146_v18 = vpop.f32.mrf.mxu1  ;;  %v179_v19 = vmax.f32 %v132_v17, 0.0 }
  0x92   :  { %v180_v21 = vmax.f32 %v146_v18, 0.0 }
  0x98   :  { %v160_v20 = vpop.f32.mrf.mxu2  ;;  %v134_v23 = vpop.f32.mrf.mxu0 }
  0x99   :  { %v174_v22 = vpop.f32.mrf.mxu3  ;;  %v183_v24 = vmax.f32 %v134_v23, 0.0  ;;  %v148_v25 = vpop.f32.mrf.mxu1  ;;  %v181_v30 = vmax.f32 %v160_v20, 0.0 }
  0x9a   :  { %v184_v26 = vmax.f32 %v148_v25, 0.0  ;;  %v182_v33 = vmax.f32 %v174_v22, 0.0 }
  0x9b   :  { %v187_v27 = vpack.c.bf16 %v183_v24, %v179_v19 }
  0x9c   :  { %v188_v28 = vpack.c.bf16 %v184_v26, %v180_v21 }
  0x9d   :  { %457 = vmatmul.bf16.vlgmr.msrb.gmra.mxu0 %v187_v27 }
  0x9e   :  { %471 = vmatmul.bf16.vlgmr.msrb.gmra.mxu1 %v188_v28 }
  0xa0   :  { %v162_v29 = vpop.f32.mrf.mxu2 }
  0xa1   :  { %v185_v31 = vmax.f32 %v162_v29, 0.0  ;;  %v176_v32 = vpop.f32.mrf.mxu3 }
  0xa2   :  { %v186_v34 = vmax.f32 %v176_v32, 0.0 }
  0xa3   :  { %v189_v35 = vpack.c.bf16 %v185_v31, %v181_v30 }
  0xa4   :  { %v190_v36 = vpack.c.bf16 %v186_v34, %v182_v33 }
  0xa5   :  { %485 = vmatmul.bf16.vlgmr.msrb.gmra.mxu2 %v189_v35 }
  0xa6   :  { %499 = vmatmul.bf16.vlgmr.msrb.gmra.mxu3 %v190_v36 }
 0x11a   :  { %v458_v38 = vpop.f32.mrf.mxu0 }
 0x11b   :  { %v459_v40 = vadd.f32 %v458_v38, %v255_v39  ;;  %v472_v41 = vpop.f32.mrf.mxu1 }
 0x11d   :  { %v473_v42 = vadd.f32 %v472_v41, %v459_v40 }
 0x122   :  { %v460_v44 = vpop.f32.mrf.mxu0 }
 0x123   :  { %v461_v48 = vadd.f32 %v460_v44, %v256_v43  ;;  %v474_v51 = vpop.f32.mrf.mxu1 }
 0x125   :  { %v475_v52 = vadd.f32 %v474_v51, %v461_v48 }
 0x128   :  { %v486_v45 = vpop.f32.mrf.mxu2 }
 0x129   :  { %v487_v46 = vadd.f32 %v486_v45, %v473_v42  ;;  %v500_v47 = vpop.f32.mrf.mxu3 }
 0x12b   :  { %v501_v49 = vadd.f32 %v500_v47, %v487_v46 }
 0x12d   :  { %v505_v50 = vsel %vm119_vm0, %v501_v49, 0.0 }
 0x12e   :  { %506 = vadd.xlane.f32.xlu0 %v505_v50 }
 0x130   :  { %v488_v53 = vpop.f32.mrf.mxu2 }
 0x131   :  { %v489_v54 = vadd.f32 %v488_v53, %v475_v52  ;;  %v502_v55 = vpop.f32.mrf.mxu3 }
 0x133   :  { %v503_v56 = vadd.f32 %v502_v55, %v489_v54 }
 0x135   :  { %v508_v57 = vsel %vm119_vm0, %v503_v56, 0.0 }
 0x136   :  { %509 = vadd.xlane.f32.xlu0 %v508_v57 }
 0x1a1   :  { %v507_v1 = vpop.xlane.xlu0 %506 }
 0x1a2   :  { %v518_v2 = vmul.f32 %v517_v0, %v507_v1 }
 0x1a4   :  { %v520_v3 = vsub.f32 %v501_v49, %v518_v2 }
 0x1a6   :  { %v522_v4 = vmul.f32 %v520_v3, %v520_v3 }
 0x1a8   :  { %v524_v5 = vsel %vm119_vm0, %v522_v4, 0.0 }
 0x1a9   :  { %525 = vadd.xlane.f32.xlu1 %v524_v5  ;;  %v510_v6 = vpop.xlane.xlu0 %509 }
 0x1aa   :  { %v519_v7 = vmul.f32 %v517_v0, %v510_v6 }
 0x1ac   :  { %v521_v8 = vsub.f32 %v503_v56, %v519_v7 }
 0x1ae   :  { %v523_v9 = vmul.f32 %v521_v8, %v521_v8 }
 0x1b0   :  { %v527_v10 = vsel %vm119_vm0, %v523_v9, 0.0 }
 0x1b1   :  { %528 = vadd.xlane.f32.xlu1 %v527_v10 }
 0x21c   :  { %v526_v11 = vpop.xlane.xlu1 %525 }
 0x21d   :  { %v530_v12 = vmul.f32 %v526_v11, %v517_v0 }
 0x21f   :  { %v532_v13 = vadd.f32 1e-05, %v530_v12 }
 0x221   :  { %831 = vrsqrt.f32 %v532_v13  ;;  %vm540_vm3 = vweird.f32 %v532_v13 }
 0x224   :  { %v529_v14 = vpop.xlane.xlu1 %528 }
 0x225   :  { %v531_v15 = vmul.f32 %v529_v14, %v517_v0 }
 0x227   :  { %v832_v16 = vpop.eup %831  ;;  %v533_v17 = vadd.f32 1e-05, %v531_v15 }
 0x228   :  { %v535_v18 = vmul.f32 %v832_v16, %v532_v13  ;;  %vm541_vm2 = vweird.f32 %v832_v16 }
 0x229   :  { %833 = vrsqrt.f32 %v533_v17  ;;  %vm542_vm4 = vmor %vm540_vm3, %vm541_vm2  ;;  %vm550_vm6 = vweird.f32 %v533_v17 }
 0x22a   :  { %v536_v19 = vmul.f32 %v832_v16, %v535_v18 }
 0x22c   :  { %v537_v20 = vmul.f32 0.5, %v536_v19 }
 0x22e   :  { %v538_v21 = vsub.f32 1.5, %v537_v20 }
 0x22f   :  { %v834_v22 = vpop.eup %833 }
 0x230   :  { %v539_v23 = vmul.f32 %v832_v16, %v538_v21  ;;  %v545_v24 = vmul.f32 %v834_v22, %v533_v17  ;;  %vm551_vm5 = vweird.f32 %v834_v22 }
 0x231   :  { %vm552_vm7 = vmor %vm550_vm6, %vm551_vm5 }
 0x232   :  { %v543_v25 = vsel %vm542_vm4, %v832_v16, %v539_v23  ;;  %v546_v26 = vmul.f32 %v834_v22, %v545_v24 }
 0x233   :  { %v554_v27 = vmul.f32 %v543_v25, %v520_v3 }
 0x234   :  { %v547_v28 = vmul.f32 0.5, %v546_v26 }
 0x235   :  { %556 = vst.msk [vmem:[#allocation2] sm:$0xff] %vm119_vm0, %v554_v27 }
 0x236   :  { %v548_v29 = vsub.f32 1.5, %v547_v28 }
 0x238   :  { %v549_v30 = vmul.f32 %v834_v22, %v548_v29 }
 0x23a   :  { %v553_v31 = vsel %vm552_vm7, %v834_v22, %v549_v30 }
 0x23b   :  { %v555_v32 = vmul.f32 %v553_v31, %v521_v8 }
 0x23d   :  { %557 = vst.msk [vmem:[#allocation2 + $0x8] sm:$0xff] %vm119_vm0, %v555_v32 }
 0x23e   :  { %570 = dma.vmem_to_hbm [thread:$0]  %s563_s5, 256, %s565_s8, [#allocation3], %s863_s9, %s863_s9, %s864_s10  }
 0x23f   :  { %859 = dma.done.wait [#allocation3], 256  }
 0x240   :  { %860 = vsyncadd [#allocation3], 4294967040 }
 0x241   :  { %575 = vsyncpa [#allocation3], 1 }

</bundles_post_ra>
